<compile_context>
chip_gen: v7x
topology: tpu7x:2x2x1
jax: 0.10.0
libtpu: 0.0.40
codegen_flags: <defaults>
</compile_context>

<pallas_src>
import math

import jax
import jax.numpy as jnp
from jax import lax
from jax.experimental import pallas as pl
from jax.experimental.pallas import tpu as pltpu

BN_EPS = 1e-5
OUT_PAD = 128  # lane-dense output width (real output is column 0)


def _gelu_exact(x):
    # PyTorch nn.GELU() default: 0.5 * x * (1 + erf(x / sqrt(2)))
    return 0.5 * x * (1.0 + lax.erf(x * (1.0 / math.sqrt(2.0))))


def _round_up(n, m):
    return ((n + m - 1) // m) * m


# ----------------------------------------------------------------------------
# Kernel: (TM, in_dim) bf16 tile -> 3x (matmul + bias + GELU) -> proj matmul
# ----------------------------------------------------------------------------
def proj_layer_kernel(
    x_ref,
    w1_ref, b1_ref,
    w2_ref, b2_ref,
    w3_ref, b3_ref,
    wp_ref, bp_ref,
    o_ref,
):
    h = x_ref[...]  # bf16

    # layer 1: (folded) linear -> GELU   (dropout == identity in eval)
    a = jnp.dot(h, w1_ref[...], preferred_element_type=jnp.float32) + b1_ref[...]
    h = _gelu_exact(a).astype(jnp.bfloat16)

    # layer 2
    a = jnp.dot(h, w2_ref[...], preferred_element_type=jnp.float32) + b2_ref[...]
    h = _gelu_exact(a).astype(jnp.bfloat16)

    # layer 3
    a = jnp.dot(h, w3_ref[...], preferred_element_type=jnp.float32) + b3_ref[...]
    h = _gelu_exact(a).astype(jnp.bfloat16)

    # proj (+ folded bn4); weight lane-padded to 128 cols -> unmasked store
    a = jnp.dot(h, wp_ref[...], preferred_element_type=jnp.float32) + bp_ref[...]
    o_ref[...] = a.astype(o_ref.dtype)


# ----------------------------------------------------------------------------
# Parameter construction mirroring ProjLayer.__init__ (eval-mode BN defaults)
# ----------------------------------------------------------------------------
def init_params(key, in_dim, hidden_dim):
    dims = [
        (in_dim, 10 * hidden_dim),          # linear
        (10 * hidden_dim, 4 * hidden_dim),  # linear2
        (4 * hidden_dim, hidden_dim),       # linear3
        (hidden_dim, 1),                    # proj
    ]
    params = []
    for (fan_in, fan_out) in dims:
        key, kw, kb = jax.random.split(key, 3)
        std = math.sqrt(2.0 / (fan_in + fan_out))           # xavier_normal_
        w = std * jax.random.normal(kw, (fan_in, fan_out), jnp.float32)
        bound = 1.0 / math.sqrt(fan_in)                     # default bias init
        b = jax.random.uniform(kb, (1, fan_out), jnp.float32, -bound, bound)
        gamma = jnp.ones((1, fan_out), jnp.float32)
        beta = jnp.zeros((1, fan_out), jnp.float32)
        rmean = jnp.zeros((1, fan_out), jnp.float32)
        rvar = jnp.ones((1, fan_out), jnp.float32)
        params += [w, b, gamma, beta, rmean, rvar]
    return params


def fold_bn_into_linear(params):
    """Eval-mode BN folding: y = (x@w + b - m)*g*rsqrt(v+eps) + beta."""
    folded = []
    for i in range(4):
        w, b, g, be, m, v = params[6 * i: 6 * (i + 1)]
        scale = g * lax.rsqrt(v + BN_EPS)        # (1, fan_out)
        folded.append((w * scale, (b - m) * scale + be))
    return folded


# ----------------------------------------------------------------------------
# Wrapper
# ----------------------------------------------------------------------------
def proj_layer_forward(x, params, *, tm=128):
    B, in_dim = x.shape

    (w1, b1), (w2, b2), (w3, b3), (wp, bp) = fold_bn_into_linear(params)

    # lane-pad the final (hidden, 1) projection to (hidden, 128) with zeros
    wp = jnp.pad(wp, ((0, 0), (0, OUT_PAD - wp.shape[1])))
    bp = jnp.pad(bp, ((0, 0), (0, OUT_PAD - bp.shape[1])))

    # batch tiling: tm divisible by 8, batch padded to a multiple of tm
    tm = min(tm, _round_up(B, 8))
    b_pad = _round_up(B, tm)
    if b_pad != B:
        x = jnp.pad(x, ((0, b_pad - B), (0, 0)))

    x_bf = x.astype(jnp.bfloat16)
    w1b = w1.astype(jnp.bfloat16)
    w2b = w2.astype(jnp.bfloat16)
    w3b = w3.astype(jnp.bfloat16)
    wpb = wp.astype(jnp.bfloat16)

    def resident(arr):  # whole array, re-used (not re-DMA'd) across grid steps
        return pl.BlockSpec(arr.shape, lambda i: (0, 0))

    grid_spec = pltpu.PrefetchScalarGridSpec(
        num_scalar_prefetch=0,
        grid=(b_pad // tm,),
        in_specs=[
            pl.BlockSpec((tm, in_dim), lambda i: (i, 0)),   # x tile (streams)
            resident(w1b), resident(b1),
            resident(w2b), resident(b2),
            resident(w3b), resident(b3),
            resident(wpb), resident(bp),
        ],
        out_specs=pl.BlockSpec((tm, OUT_PAD), lambda i: (i, 0)),
    )

    out = pl.pallas_call(
        proj_layer_kernel,
        out_shape=jax.ShapeDtypeStruct((b_pad, OUT_PAD), jnp.float32),
        grid_spec=grid_spec,
        compiler_params=pltpu.CompilerParams(
            dimension_semantics=("parallel",),
        ),
    )(x_bf, w1b, b1, w2b, b2, w3b, b3, wpb, bp)

    return out[:B, :1]


# ----------------------------------------------------------------------------
# References
# ----------------------------------------------------------------------------
def reference_exact_f32(x, params):
    """Literal eval-mode ProjLayer forward in f32 (un-folded BN, exact GELU)."""
    h = x
    for i in range(4):
        w, b, g, be, m, v = params[6 * i: 6 * (i + 1)]
        h = jnp.dot(h, w) + b
        h = (h - m) * lax.rsqrt(v + BN_EPS) * g + be
        if i < 3:
            h = _gelu_exact(h)
    return h


def reference_matched(x, params):
    """Same folded / bf16-matmul arithmetic as the kernel, in plain JAX."""
    folded = fold_bn_into_linear(params)
    h = x.astype(jnp.bfloat16)
    out = None
    for i, (w, b) in enumerate(folded):
        a = jnp.dot(h, w.astype(jnp.bfloat16),
                    preferred_element_type=jnp.float32) + b
        if i < 3:
            h = _gelu_exact(a).astype(jnp.bfloat16)
        else:
            out = a
    return out


def _allclose(a, b, atol, rtol):
    return bool(jnp.all(jnp.abs(a - b) <= atol + rtol * jnp.abs(b)))


if __name__ == "__main__":
    key = jax.random.PRNGKey(0)
    in_dim, hidden_dim = 16, 32

    key, kp = jax.random.split(key)
    params = init_params(kp, in_dim, hidden_dim)

    ok = True
    for B in (8, 100, 256):   # single-tile, padded-tile, and multi-step grid
        key, kx = jax.random.split(key)
        x = jax.random.normal(kx, (B, in_dim), jnp.float32)

        out = jax.block_until_ready(proj_layer_forward(x, params, tm=128))
        assert out.shape == (B, 1)

        ref_m = reference_matched(x, params)        # same precision path
        ref_e = reference_exact_f32(x, params)      # PyTorch eval semantics, f32

        ok &= _allclose(out, ref_m, atol=1e-3, rtol=1e-3)
        ok &= _allclose(out, ref_e, atol=5e-2, rtol=5e-2)

    assert ok, "mismatch vs JAX references"
    print("KERNEL_OK")
</pallas_src>

<mosaic_0001>
module attributes {stable_mosaic.version = 11 : i64} {
  func.func @proj_layer_kernel(%arg0: i32, %arg1: memref<8x16xbf16, #tpu.memory_space<vmem>>, %arg2: memref<16x320xbf16, #tpu.memory_space<vmem>>, %arg3: memref<1x320xf32, #tpu.memory_space<vmem>>, %arg4: memref<320x128xbf16, #tpu.memory_space<vmem>>, %arg5: memref<1x128xf32, #tpu.memory_space<vmem>>, %arg6: memref<128x32xbf16, #tpu.memory_space<vmem>>, %arg7: memref<1x32xf32, #tpu.memory_space<vmem>>, %arg8: memref<32x128xbf16, #tpu.memory_space<vmem>>, %arg9: memref<1x128xf32, #tpu.memory_space<vmem>>, %arg10: memref<8x128xf32, #tpu.memory_space<vmem>>) attributes {dimension_semantics = [#tpu.dimension_semantics<parallel>], iteration_bounds = array<i64: 1>, scalar_prefetch = 0 : i64, scratch_operands = 0 : i64, tpu.core_type = #tpu.core_type<tc>, window_params = [{transform_indices = @transform_0, window_bounds = array<i64: 8, 16>}, {pipeline_mode = #tpu.pipeline_mode<synchronous>, transform_indices = @transform_1, window_bounds = array<i64: 16, 320>}, {pipeline_mode = #tpu.pipeline_mode<synchronous>, transform_indices = @transform_2, window_bounds = array<i64: 1, 320>}, {pipeline_mode = #tpu.pipeline_mode<synchronous>, transform_indices = @transform_3, window_bounds = array<i64: 320, 128>}, {pipeline_mode = #tpu.pipeline_mode<synchronous>, transform_indices = @transform_4, window_bounds = array<i64: 1, 128>}, {pipeline_mode = #tpu.pipeline_mode<synchronous>, transform_indices = @transform_5, window_bounds = array<i64: 128, 32>}, {pipeline_mode = #tpu.pipeline_mode<synchronous>, transform_indices = @transform_6, window_bounds = array<i64: 1, 32>}, {pipeline_mode = #tpu.pipeline_mode<synchronous>, transform_indices = @transform_7, window_bounds = array<i64: 32, 128>}, {pipeline_mode = #tpu.pipeline_mode<synchronous>, transform_indices = @transform_8, window_bounds = array<i64: 1, 128>}, {transform_indices = @transform_9, window_bounds = array<i64: 8, 128>}]} {
    %c0 = arith.constant 0 : index
    %c0_0 = arith.constant 0 : index
    %0 = vector.load %arg1[%c0, %c0_0] : memref<8x16xbf16, #tpu.memory_space<vmem>>, vector<8x16xbf16>
    %c0_1 = arith.constant 0 : index
    %c0_2 = arith.constant 0 : index
    %1 = vector.load %arg2[%c0_1, %c0_2] : memref<16x320xbf16, #tpu.memory_space<vmem>>, vector<16x320xbf16>
    %cst = arith.constant dense<0.000000e+00> : vector<8x320xf32>
    %2 = tpu.matmul %0, %1, %cst {dimension_numbers = #tpu.dot_dimension_numbers<[1], [0], [0], [1], [0, 0, 1, 1], [], []>} : vector<8x16xbf16>, vector<16x320xbf16>, vector<8x320xf32> -> vector<8x320xf32>
    %c0_3 = arith.constant 0 : index
    %c0_4 = arith.constant 0 : index
    %3 = vector.load %arg3[%c0_3, %c0_4] : memref<1x320xf32, #tpu.memory_space<vmem>>, vector<1x320xf32>
    %4 = vector.broadcast %3 : vector<1x320xf32> to vector<8x320xf32>
    %5 = arith.addf %2, %4 : vector<8x320xf32>
    %cst_5 = arith.constant 5.000000e-01 : f32
    %6 = vector.broadcast %cst_5 : f32 to vector<8x320xf32>
    %7 = arith.mulf %6, %5 : vector<8x320xf32>
    %cst_6 = arith.constant 0.707106769 : f32
    %8 = vector.broadcast %cst_6 : f32 to vector<8x320xf32>
    %9 = arith.mulf %5, %8 : vector<8x320xf32>
    %10 = math.erf %9 : vector<8x320xf32>
    %cst_7 = arith.constant 1.000000e+00 : f32
    %11 = vector.broadcast %cst_7 : f32 to vector<8x320xf32>
    %12 = arith.addf %11, %10 : vector<8x320xf32>
    %13 = arith.mulf %7, %12 : vector<8x320xf32>
    %14 = arith.truncf %13 : vector<8x320xf32> to vector<8x320xbf16>
    %c0_8 = arith.constant 0 : index
    %c0_9 = arith.constant 0 : index
    %15 = vector.load %arg4[%c0_8, %c0_9] : memref<320x128xbf16, #tpu.memory_space<vmem>>, vector<320x128xbf16>
    %cst_10 = arith.constant dense<0.000000e+00> : vector<8x128xf32>
    %16 = tpu.matmul %14, %15, %cst_10 {dimension_numbers = #tpu.dot_dimension_numbers<[1], [0], [0], [1], [0, 0, 1, 1], [], []>} : vector<8x320xbf16>, vector<320x128xbf16>, vector<8x128xf32> -> vector<8x128xf32>
    %c0_11 = arith.constant 0 : index
    %c0_12 = arith.constant 0 : index
    %17 = vector.load %arg5[%c0_11, %c0_12] : memref<1x128xf32, #tpu.memory_space<vmem>>, vector<1x128xf32>
    %18 = vector.broadcast %17 : vector<1x128xf32> to vector<8x128xf32>
    %19 = arith.addf %16, %18 : vector<8x128xf32>
    %cst_13 = arith.constant 5.000000e-01 : f32
    %20 = vector.broadcast %cst_13 : f32 to vector<8x128xf32>
    %21 = arith.mulf %20, %19 : vector<8x128xf32>
    %cst_14 = arith.constant 0.707106769 : f32
    %22 = vector.broadcast %cst_14 : f32 to vector<8x128xf32>
    %23 = arith.mulf %19, %22 : vector<8x128xf32>
    %24 = math.erf %23 : vector<8x128xf32>
    %cst_15 = arith.constant 1.000000e+00 : f32
    %25 = vector.broadcast %cst_15 : f32 to vector<8x128xf32>
    %26 = arith.addf %25, %24 : vector<8x128xf32>
    %27 = arith.mulf %21, %26 : vector<8x128xf32>
    %28 = arith.truncf %27 : vector<8x128xf32> to vector<8x128xbf16>
    %c0_16 = arith.constant 0 : index
    %c0_17 = arith.constant 0 : index
    %29 = vector.load %arg6[%c0_16, %c0_17] : memref<128x32xbf16, #tpu.memory_space<vmem>>, vector<128x32xbf16>
    %cst_18 = arith.constant dense<0.000000e+00> : vector<8x32xf32>
    %30 = tpu.matmul %28, %29, %cst_18 {dimension_numbers = #tpu.dot_dimension_numbers<[1], [0], [0], [1], [0, 0, 1, 1], [], []>} : vector<8x128xbf16>, vector<128x32xbf16>, vector<8x32xf32> -> vector<8x32xf32>
    %c0_19 = arith.constant 0 : index
    %c0_20 = arith.constant 0 : index
    %31 = vector.load %arg7[%c0_19, %c0_20] : memref<1x32xf32, #tpu.memory_space<vmem>>, vector<1x32xf32>
    %32 = vector.broadcast %31 : vector<1x32xf32> to vector<8x32xf32>
    %33 = arith.addf %30, %32 : vector<8x32xf32>
    %cst_21 = arith.constant 5.000000e-01 : f32
    %34 = vector.broadcast %cst_21 : f32 to vector<8x32xf32>
    %35 = arith.mulf %34, %33 : vector<8x32xf32>
    %cst_22 = arith.constant 0.707106769 : f32
    %36 = vector.broadcast %cst_22 : f32 to vector<8x32xf32>
    %37 = arith.mulf %33, %36 : vector<8x32xf32>
    %38 = math.erf %37 : vector<8x32xf32>
    %cst_23 = arith.constant 1.000000e+00 : f32
    %39 = vector.broadcast %cst_23 : f32 to vector<8x32xf32>
    %40 = arith.addf %39, %38 : vector<8x32xf32>
    %41 = arith.mulf %35, %40 : vector<8x32xf32>
    %42 = arith.truncf %41 : vector<8x32xf32> to vector<8x32xbf16>
    %c0_24 = arith.constant 0 : index
    %c0_25 = arith.constant 0 : index
    %43 = vector.load %arg8[%c0_24, %c0_25] : memref<32x128xbf16, #tpu.memory_space<vmem>>, vector<32x128xbf16>
    %cst_26 = arith.constant dense<0.000000e+00> : vector<8x128xf32>
    %44 = tpu.matmul %42, %43, %cst_26 {dimension_numbers = #tpu.dot_dimension_numbers<[1], [0], [0], [1], [0, 0, 1, 1], [], []>} : vector<8x32xbf16>, vector<32x128xbf16>, vector<8x128xf32> -> vector<8x128xf32>
    %c0_27 = arith.constant 0 : index
    %c0_28 = arith.constant 0 : index
    %45 = vector.load %arg9[%c0_27, %c0_28] : memref<1x128xf32, #tpu.memory_space<vmem>>, vector<1x128xf32>
    %46 = vector.broadcast %45 : vector<1x128xf32> to vector<8x128xf32>
    %47 = arith.addf %44, %46 : vector<8x128xf32>
    %c0_29 = arith.constant 0 : index
    %c0_30 = arith.constant 0 : index
    %48 = vector.load %arg10[%c0_29, %c0_30] : memref<8x128xf32, #tpu.memory_space<vmem>>, vector<8x128xf32>
    tpu.vector_store %arg10[%c0_29, %c0_30], %47 {strides = array<i32>} : memref<8x128xf32, #tpu.memory_space<vmem>>, vector<8x128xf32>,
    return
  }
  func.func @transform_0(%arg0: i32) -> (i32, i32) {
    %c0_i32 = arith.constant 0 : i32
    %c0_i32_0 = arith.constant 0 : i32
    return %arg0, %c0_i32 : i32, i32
  }
  func.func @transform_1(%arg0: i32) -> (i32, i32) {
    %c0_i32 = arith.constant 0 : i32
    %c0_i32_0 = arith.constant 0 : i32
    %c0_i32_1 = arith.constant 0 : i32
    return %c0_i32, %c0_i32_0 : i32, i32
  }
  func.func @transform_2(%arg0: i32) -> (i32, i32) {
    %c0_i32 = arith.constant 0 : i32
    %c0_i32_0 = arith.constant 0 : i32
    %c0_i32_1 = arith.constant 0 : i32
    return %c0_i32, %c0_i32_0 : i32, i32
  }
  func.func @transform_3(%arg0: i32) -> (i32, i32) {
    %c0_i32 = arith.constant 0 : i32
    %c0_i32_0 = arith.constant 0 : i32
    %c0_i32_1 = arith.constant 0 : i32
    return %c0_i32, %c0_i32_0 : i32, i32
  }
  func.func @transform_4(%arg0: i32) -> (i32, i32) {
    %c0_i32 = arith.constant 0 : i32
    %c0_i32_0 = arith.constant 0 : i32
    %c0_i32_1 = arith.constant 0 : i32
    return %c0_i32, %c0_i32_0 : i32, i32
  }
  func.func @transform_5(%arg0: i32) -> (i32, i32) {
    %c0_i32 = arith.constant 0 : i32
    %c0_i32_0 = arith.constant 0 : i32
    %c0_i32_1 = arith.constant 0 : i32
    return %c0_i32, %c0_i32_0 : i32, i32
  }
  func.func @transform_6(%arg0: i32) -> (i32, i32) {
    %c0_i32 = arith.constant 0 : i32
    %c0_i32_0 = arith.constant 0 : i32
    %c0_i32_1 = arith.constant 0 : i32
    return %c0_i32, %c0_i32_0 : i32, i32
  }
  func.func @transform_7(%arg0: i32) -> (i32, i32) {
    %c0_i32 = arith.constant 0 : i32
    %c0_i32_0 = arith.constant 0 : i32
    %c0_i32_1 = arith.constant 0 : i32
    return %c0_i32, %c0_i32_0 : i32, i32
  }
  func.func @transform_8(%arg0: i32) -> (i32, i32) {
    %c0_i32 = arith.constant 0 : i32
    %c0_i32_0 = arith.constant 0 : i32
    %c0_i32_1 = arith.constant 0 : i32
    return %c0_i32, %c0_i32_0 : i32, i32
  }
  func.func @transform_9(%arg0: i32) -> (i32, i32) {
    %c0_i32 = arith.constant 0 : i32
    %c0_i32_0 = arith.constant 0 : i32
    return %arg0, %c0_i32 : i32, i32
  }
}

</mosaic_0001>

<bundles_post_ra>
// kernel: tpu_custom_call.1
= control target key start
LH: loop header
LB: loop body
LE: loop exit
PB: predicated region body
PF: predicated region fallthrough
CT: control target
= control target key end

     0   :  { %14 = vsyncpa [#allocation3], 0  ;;  %s1030_s0 = inlined_call_operand.vmem [shape: bf16[8,16], index: 0, kind: input, shape index: {}]   ;;  %s1031_s1 = inlined_call_operand.vmem [shape: bf16[16,320], index: 1, kind: input, shape index: {}]   ;;  %s1032_s2 = inlined_call_operand.vmem [shape: f32[1,320], index: 2, kind: input, shape index: {}]   ;;  %s1033_s3 = inlined_call_operand.hbm [shape: bf16[320,128], index: 3, kind: input, shape index: {}]   ;;  %s1034_s4 = inlined_call_operand.vmem [shape: f32[1,128], index: 4, kind: input, shape index: {}]   ;;  %s1035_s5 = inlined_call_operand.vmem [shape: bf16[128,32], index: 5, kind: input, shape index: {}]   ;;  %s1036_s6 = inlined_call_operand.vmem [shape: f32[1,32], index: 6, kind: input, shape index: {}]   ;;  %s1037_s7 = inlined_call_operand.vmem [shape: bf16[32,128], index: 7, kind: input, shape index: {}]   ;;  %s1038_s8 = inlined_call_operand.vmem [shape: f32[1,128], index: 8, kind: input, shape index: {}]   ;;  %s1039_s9 = inlined_call_operand.hbm [shape: f32[8,128], index: 9, kind: output, shape index: {}]  }
   0x1   :  { %15 = vsyncpa [#allocation4], 0  ;;  %s872_s30 = smov [#allocation2]   ;;  %s824_s13 = scalar_lea.hbm %s1033_s3, 2560 }
   0x2   :  { %s27_s10 = sshll.u32 %s872_s30, 4  ;;  %p825_p0 = scmp.ne.s32.totalorder %s1033_s3, %s824_s13  ;;  %s28_s10 = int_to_ptr.vmem [resolvable:$true] %s27_s10 }
   0x3   :  { %p828_p1 = scmp.lt.u32.totalorder %s824_s13, %s1033_s3 }
   0x5   :  { %p830_p2 = pnand %p828_p1, %p825_p0 }
   0x7   :  { %833 = shalt.err (!%p830_p2)
}
   0x8   :  { %s834_s18 = scalar_lea.vmem %s28_s10, 2560  ;;  %p839_p4 = scmp.lt.s32.totalorder %s28_s10, %s28_s10 }
   0x9   :  { %p835_p3 = scmp.ne.s32.totalorder %s28_s10, %s834_s18  ;;  %p840_p5 = scmp.lt.s32.totalorder %s834_s18, %s834_s18 }
   0xb   :  { %p841_p6 = por %p840_p5, %p839_p4 }
   0xd   :  { %p842_p7 = pnand %p841_p6, %p835_p3 }
   0xf   :  { %845 = shalt.err (!%p842_p7)
}
  0x10   :  { %s873_s19 = smov 64   ;;  %s874_s20 = smov 4  }
  0x11   :  { %33 = dma.hbm_to_vmem [thread:$0]  %s1033_s3, 2560, %s28_s10, [#allocation3], %s873_s19, %s873_s19, %s874_s20  }
  0x12   :  { %868 = dma.done.wait [#allocation3], 2560  }
  0x13   :  { %869 = vsyncadd [#allocation3], 4294964736  ;;  %v875_v0 = vmov 0.0   ;;  %vm876_vm0 = vmmov 0   ;;  %v877_v1 = vmov 0   ;;  %vm86_vm1 = vcmask 130048  }
  0x14   :  { %727 = vmatprep.subr.bf16.mxu1 %v875_v0  ;;  %729 = vmatprep.mubr.msk.bf16.mxu1 %vm876_vm0, %v875_v0  ;;  %v780_v2 = vld [vmem:[%s1031_s1 + $0x4] ss:$12 sps:$4 sm:$0xff]   ;;  %v782_v3 = vld [vmem:[%s1031_s1 + $0x8] ss:$12 sps:$4 sm:$0xff]   ;;  %v783_v4 = vld [vmem:[%s1031_s1] ss:$12 sps:$4 sm:$0xff]   ;;  %v55_v26 = vlaneseq }
  0x15   :  { %122 = vmatprep.mubr.bf16.mxu0 %v877_v1  ;;  %90 = vmatprep.subr.bf16.mxu0 %v780_v2  ;;  %v48_v5 = vld [vmem:[%s1030_s0] sm:$0xf]  ;;  %v786_v8 = vld [vmem:[#allocation2 + $0x48] sm:$0xff]   ;;  %v788_v10 = vld [vmem:[#allocation2 + $0x50] sm:$0xff]   ;;  %vm356_vm2 = vcmask 523264   ;;  %vm586_vm3 = vcmask 261120  }
  0x16   :  { %728 = vmatpush3.bf16.msra.mxu1 %v782_v3  ;;  %v784_v6 = vld [vmem:[#allocation2 + $0x40] sm:$0xff]   ;;  %91 = vmatpush1.bf16.msra.mxu0 %v783_v4  ;;  %v787_v9 = vld [vmem:[#allocation2 + $0x8] sm:$0xff]   ;;  %v789_v11 = vld [vmem:[#allocation2 + $0x10] sm:$0xff]   ;;  %v56_v27 = vshrl.u32 %v55_v26, 7  ;;  %s878_s0 = smov [#allocation5]  }
  0x17   :  { %v785_v7 = vld [vmem:[#allocation2] sm:$0xff]   ;;  %733 = vmatprep.subr.bf16.mxu1 %v875_v0  ;;  %688 = vmatprep.subr.bf16.mxu0 %v784_v6  ;;  %v790_v12 = vld [vmem:[#allocation2 + $0x58] sm:$0xff]   ;;  %v795_v17 = vld [vmem:[#allocation2 + $0x88] sm:$0xff]  }
  0x18   :  { %v791_v13 = vld [vmem:[#allocation2 + $0x18] sm:$0xff]   ;;  %v792_v14 = vld [vmem:[#allocation2 + $0x80] sm:$0xff]   ;;  %v796_v18 = vld [vmem:[#allocation2 + $0x68] sm:$0xff]   ;;  %v65_v28 = vsub.s32 2, %v56_v27  ;;  %v57_v30 = vsub.s32 0, %v56_v27  ;;  %v61_v31 = vsub.s32 1, %v56_v27 }
  0x19   :  { %730 = vmatmul.mubr.msk.bf16.vlgmr.msra.gmra.mrb[0].mxu1 %vm86_vm1, %v48_v5  ;;  %649 = vmatmul.mubr.msk.bf16.vlgmr.msra.gmra.mrb[0].mxu0 %vm86_vm1, %v48_v5  ;;  %v793_v15 = vld [vmem:[#allocation2 + $0x60] sm:$0xff]   ;;  %v797_v19 = vld [vmem:[#allocation2 + $0x28] sm:$0xff]   ;;  %v798_v20 = vld [vmem:[#allocation2 + $0x90] sm:$0xff]  }
  0x1a   :  { %741 = vmatprep.mubr.msk.bf16.mxu1 %vm876_vm0, %v875_v0  ;;  %689 = vmatpush3.bf16.msra.mxu0 %v785_v7  ;;  %v794_v16 = vld [vmem:[#allocation2 + $0x20] sm:$0xff]   ;;  %v799_v21 = vld [vmem:[#allocation2 + $0x70] sm:$0xff]   ;;  %v801_v23 = vld [vmem:[#allocation2 + $0x98] sm:$0xff]  }
  0x1b   :  { %690 = vmatprep.subr.bf16.mxu0 %v786_v8  ;;  %734 = vmatpush3.bf16.msra.mxu1 %v792_v14  ;;  %v800_v22 = vld [vmem:[#allocation2 + $0x30] sm:$0xff]   ;;  %v802_v24 = vld [vmem:[#allocation2 + $0x78] sm:$0xff]   ;;  %v53_v29 = vld [vmem:[%s1032_s2] sm:$0x7] }
  0x1c   :  { %735 = vmatprep.subr.bf16.mxu1 %v875_v0  ;;  %v803_v25 = vld [vmem:[#allocation2 + $0x38] sm:$0xff]   ;;  %v66_v32 = vrot.slane %v53_v29, %v65_v28  ;;  %v58_v33 = vrot.slane %v53_v29, %v57_v30  ;;  %v62_v34 = vrot.slane %v53_v29, %v61_v31  ;;  %v804_v60 = vld [vmem:[%s1035_s5] sm:$0xff]   ;;  %v805_v2 = vld [vmem:[%s1035_s5 + $0x8] sm:$0xff]  }
  0x1d   :  { %v806_v3 = vld [vmem:[%s1035_s5 + $0x10] sm:$0xff]   ;;  %v807_v4 = vld [vmem:[%s1035_s5 + $0x18] sm:$0xff]   ;;  %v808_v5 = vld [vmem:[%s1035_s5 + $0x20] sm:$0xff]  }
  0x1e   :  { %691 = vmatpush3.bf16.msra.mxu0 %v787_v9  ;;  %v809_v6 = vld [vmem:[%s1035_s5 + $0x28] sm:$0xff]   ;;  %v810_v7 = vld [vmem:[%s1035_s5 + $0x30] sm:$0xff]   ;;  %v811_v8 = vld [vmem:[%s1035_s5 + $0x38] sm:$0xff]  }
  0x1f   :  { %692 = vmatprep.subr.bf16.mxu0 %v788_v10  ;;  %736 = vmatpush3.bf16.msra.mxu1 %v795_v17  ;;  %v651_v14 = vld [vmem:[%s1034_s4] ss:$0 sm:$0xff]  ;;  %v813_v28 = vld [vmem:[%s1037_s7 + $0x8] sm:$0xff]  }
  0x20   :  { %737 = vmatprep.subr.bf16.mxu1 %v875_v0  ;;  %v812_v27 = vld [vmem:[%s1037_s7] sm:$0xff]  }
  0x21   :  { %v673_v29 = vld [vmem:[%s1036_s6] ss:$0 sm:$0xff]  ;;  %s637_s6 = sshll.u32 %s878_s0, 4  ;;  %s638_s6 = int_to_ptr.vmem [resolvable:$true] %s637_s6 }
  0x22   :  { %693 = vmatpush3.bf16.msra.mxu0 %v789_v11  ;;  %s846_s1 = scalar_lea.vmem %s638_s6, 128  ;;  %p851_p9 = scmp.lt.s32.totalorder %s638_s6, %s638_s6 }
  0x23   :  { %694 = vmatprep.subr.bf16.mxu0 %v790_v12  ;;  %738 = vmatpush3.bf16.msra.mxu1 %v798_v20  ;;  %p847_p8 = scmp.ne.s32.totalorder %s638_s6, %s846_s1  ;;  %p852_p10 = scmp.lt.s32.totalorder %s846_s1, %s846_s1 }
  0x24   :  { %739 = vmatprep.subr.bf16.mxu1 %v875_v0 }
  0x25   :  { %p853_p11 = por %p852_p10, %p851_p9 }
  0x26   :  { %695 = vmatpush3.bf16.msra.mxu0 %v791_v13 }
  0x27   :  { %696 = vmatprep.subr.bf16.mxu0 %v793_v15  ;;  %740 = vmatpush3.bf16.msra.mxu1 %v801_v23  ;;  %p854_p12 = pnand %p853_p11, %p847_p8 }
  0x28   :  { %745 = vmatprep.subr.bf16.mxu1 %v875_v0 }
  0x2a   :  { %697 = vmatpush3.bf16.msra.mxu0 %v794_v16 }
  0x2b   :  { %698 = vmatprep.subr.bf16.mxu0 %v796_v18 }
  0x2e   :  { %699 = vmatpush3.bf16.msra.mxu0 %v797_v19 }
  0x2f   :  { %700 = vmatprep.subr.bf16.mxu0 %v799_v21 }
  0x32   :  { %701 = vmatpush3.bf16.msra.mxu0 %v800_v22 }
  0x33   :  { %702 = vmatprep.subr.bf16.mxu0 %v802_v24 }
  0x36   :  { %703 = vmatpush3.bf16.msra.mxu0 %v803_v25 }
  0x37   :  { %765 = vmatprep.subr.bf16.mxu0 %v875_v0 }
  0xec   :  { %v165_v35 = vpop.f32.mrb[0].mxu1  ;;  %v124_v37 = vpop.f32.mrb[0].mxu0 }
  0xed   :  { %v166_v36 = vadd.f32 %v165_v35, %v66_v32  ;;  %v731_v38 = vpop.f32.mrb[1].mxu1  ;;  %v125_v39 = vadd.f32 %v124_v37, %v58_v33  ;;  %v126_v40 = vpop.f32.mrb[1].mxu0 }
  0xee   :  { %v168_v41 = vpop.f32.mrb[2].mxu1  ;;  %v127_v43 = vadd.f32 %v126_v40, %v62_v34  ;;  %v128_v44 = vpop.f32.mrb[2].mxu0  ;;  %v682_v40 = vld [vmem:[%s1038_s8] ss:$0 sm:$0xff] }
  0xef   :  { %v176_v42 = vmul.f32 0.70710677, %v166_v36  ;;  %v732_v45 = vpop.f32.mrb[3].mxu1  ;;  %v174_v46 = vmul.f32 0.70710677, %v125_v39  ;;  %v129_v47 = vpop.f32.mrb[3].mxu0 }
  0xf0   :  { %v175_v48 = vmul.f32 0.70710677, %v127_v43  ;;  %v173_v51 = vmul.f32 0.5, %v166_v36  ;;  %v171_v54 = vmul.f32 0.5, %v125_v39  ;;  %v172_v57 = vmul.f32 0.5, %v127_v43 }
  0xf1   :  { %814 = verf.f32 %v176_v42 }
  0xf2   :  { %816 = verf.f32 %v174_v46 }
  0xf3   :  { %818 = verf.f32 %v175_v48 }
  0xfb   :  { %v815_v49 = vpop.eup %814 }
  0xfc   :  { %v817_v50 = vpop.eup %816  ;;  %v182_v52 = vadd.f32 1.0, %v815_v49 }
  0xfd   :  { %v819_v53 = vpop.eup %818  ;;  %v180_v55 = vadd.f32 1.0, %v817_v50 }
  0xfe   :  { %v185_v56 = vmul.f32 %v182_v52, %v173_v51  ;;  %v181_v58 = vadd.f32 1.0, %v819_v53 }
  0xff   :  { %v183_v59 = vmul.f32 %v180_v55, %v171_v54 }
 0x100   :  { %v188_v61 = vpack.c.bf16 %v185_v56, %v185_v56  ;;  %v184_v62 = vmul.f32 %v181_v58, %v172_v57 }
 0x101   :  { %v186_v1 = vpack.c.bf16 %v183_v59, %v183_v59 }
 0x102   :  { %742 = vmatmul.mubr.msk.bf16.vlgmr.msra.gmra.mrb[4].mxu1 %vm356_vm2, %v188_v61  ;;  %v187_v63 = vpack.c.bf16 %v184_v62, %v184_v62 }
 0x103   :  { %746 = vmatpush3.bf16.msra.mxu1 %v804_v60  ;;  %761 = vmatprep.mubr.msk.bf16.mxu1 %vm876_vm0, %v875_v0 }
 0x104   :  { %392 = vmatprep.mubr.bf16.mxu0 %v187_v63  ;;  %747 = vmatprep.subr.bf16.mxu1 %v875_v0 }
 0x105   :  { %393 = vmatmul.mubr.bf16.vlgmr.msra.gmra.mrb[4].mxu0 %v186_v1 }
 0x106   :  { %769 = vmatprep.mubr.msk.bf16.mxu0 %vm876_vm0, %v875_v0  ;;  %766 = vmatpush3.bf16.msra.mxu0 %v812_v27 }
 0x107   :  { %748 = vmatpush3.bf16.msra.mxu1 %v805_v2  ;;  %767 = vmatprep.subr.bf16.mxu0 %v875_v0 }
 0x108   :  { %749 = vmatprep.subr.bf16.mxu1 %v875_v0 }
 0x10a   :  { %768 = vmatpush3.bf16.msra.mxu0 %v813_v28 }
 0x10b   :  { %750 = vmatpush3.bf16.msra.mxu1 %v806_v3 }
 0x10c   :  { %751 = vmatprep.subr.bf16.mxu1 %v875_v0 }
 0x10f   :  { %752 = vmatpush3.bf16.msra.mxu1 %v807_v4 }
 0x110   :  { %753 = vmatprep.subr.bf16.mxu1 %v875_v0 }
 0x113   :  { %754 = vmatpush3.bf16.msra.mxu1 %v808_v5 }
 0x114   :  { %755 = vmatprep.subr.bf16.mxu1 %v875_v0 }
 0x117   :  { %756 = vmatpush3.bf16.msra.mxu1 %v809_v6 }
 0x118   :  { %757 = vmatprep.subr.bf16.mxu1 %v875_v0 }
 0x11b   :  { %758 = vmatpush3.bf16.msra.mxu1 %v810_v7 }
 0x11c   :  { %759 = vmatprep.subr.bf16.mxu1 %v875_v0 }
 0x11f   :  { %760 = vmatpush3.bf16.msra.mxu1 %v811_v8 }
 0x1d5   :  { %v434_v9 = vpop.f32.mrb[4].mxu1 }
 0x1d6   :  { %v743_v10 = vpop.f32.mrb[5].mxu1 }
 0x1d7   :  { %v437_v11 = vpop.f32.mrb[6].mxu1 }
 0x1d8   :  { %v704_v12 = vpop.f32.mrb[4].mxu0  ;;  %v744_v13 = vpop.f32.mrb[7].mxu1 }
 0x1d9   :  { %v705_v15 = vpop.f32.mrb[5].mxu0 }
 0x1da   :  { %v706_v16 = vadd.f32 %v705_v15, %v704_v12  ;;  %v707_v17 = vpop.f32.mrb[6].mxu0 }
 0x1db   :  { %v708_v18 = vpop.f32.mrb[7].mxu0 }
 0x1dc   :  { %v395_v19 = vadd.f32 %v706_v16, %v651_v14 }
 0x1de   :  { %v435_v20 = vadd.f32 %v434_v9, %v395_v19 }
 0x1e0   :  { %v441_v21 = vmul.f32 0.70710677, %v435_v20  ;;  %v440_v23 = vmul.f32 0.5, %v435_v20 }
 0x1e2   :  { %820 = verf.f32 %v441_v21 }
 0x1ec   :  { %v821_v22 = vpop.eup %820 }
 0x1ed   :  { %v443_v24 = vadd.f32 1.0, %v821_v22 }
 0x1ef   :  { %v444_v25 = vmul.f32 %v443_v24, %v440_v23 }
 0x1f1   :  { %v445_v26 = vpack.c.bf16 %v444_v25, %v444_v25 }
 0x1f3   :  { %762 = vmatmul.mubr.bf16.vlgmr.msra.gmra.mrb[8].mxu1 %v445_v26 }
 0x2c6   :  { %v551_v30 = vpop.f32.mrb[8].mxu1 }
 0x2c7   :  { %v552_v31 = vadd.f32 %v673_v29, %v551_v30  ;;  %v763_v32 = vpop.f32.mrb[9].mxu1 }
 0x2c8   :  { %v554_v33 = vpop.f32.mrb[10].mxu1 }
 0x2c9   :  { %v558_v34 = vmul.f32 0.70710677, %v552_v31  ;;  %v764_v35 = vpop.f32.mrb[11].mxu1  ;;  %v557_v37 = vmul.f32 0.5, %v552_v31 }
 0x2cb   :  { %822 = verf.f32 %v558_v34 }
 0x2d5   :  { %v823_v36 = vpop.eup %822 }
 0x2d6   :  { %v560_v38 = vadd.f32 1.0, %v823_v36 }
 0x2d8   :  { %v561_v0 = vmul.f32 %v560_v38, %v557_v37 }
 0x2da   :  { %v562_v39 = vpack.c.bf16 %v561_v0, %v561_v0 }
 0x2dc   :  { %770 = vmatmul.mubr.msk.bf16.vlgmr.msra.gmra.mrb[8].mxu0 %vm586_vm3, %v562_v39 }
 0x3af   :  { %v624_v41 = vpop.f32.mrb[8].mxu0 }
 0x3b0   :  { %v625_v42 = vadd.f32 %v682_v40, %v624_v41  ;;  %v771_v43 = vpop.f32.mrb[9].mxu0 }
 0x3b1   :  { %v627_v44 = vpop.f32.mrb[10].mxu0 }
 0x3b2   :  { %630 = vst [vmem:[#allocation5] sm:$0xff] %v625_v42  ;;  %v772_v45 = vpop.f32.mrb[11].mxu0 }
 0x3b3   :  { %857 = shalt.err (!%p854_p12)
}
 0x3b4   :  { %s858_s8 = scalar_lea.hbm %s1039_s9, 128 }
 0x3b5   :  { %p859_p13 = scmp.ne.s32.totalorder %s1039_s9, %s858_s8  ;;  %p862_p0 = scmp.lt.u32.totalorder %s858_s8, %s1039_s9 }
 0x3b7   :  { %p864_p1 = pnand %p862_p0, %p859_p13 }
 0x3b9   :  { %867 = shalt.err (!%p864_p1)
}
 0x3ba   :  { %640 = dma.vmem_to_hbm [thread:$0]  %s638_s6, 128, %s1039_s9, [#allocation4]  }
 0x3bb   :  { %870 = dma.done.wait [#allocation4], 128  }
 0x3bc   :  { %871 = vsyncadd [#allocation4], 4294967168 }
 0x3bd   :  { %644 = vsyncpa [#allocation3], 1 }
 0x3be   :  { %645 = vsyncpa [#allocation4], 1 }

</bundles_post_ra>
